<compile_context>
chip_gen: v6e
topology: v6e:2x2x1
jax: 0.10.0
libtpu: 0.0.40
codegen_flags: <defaults>
</compile_context>

<pallas_src>
import jax
import jax.numpy as jnp
from jax.experimental import pallas as pl
from jax.experimental.pallas import tpu as pltpu

_MIB = 1024 * 1024
_PALLAS_MIN_FLOPS = 32 * 1000 * 1000  # below this, XLA fusion beats a kernel


# ----------------------------- Pallas kernels -------------------------------

def _linear_kernel(x_ref, w_ref, b_ref, o_ref):
    # x: (tm, H) bf16/f32, w: (H, tn), b: (1, tn) f32, o: (tm, tn).
    acc = jnp.dot(x_ref[...], w_ref[...], preferred_element_type=jnp.float32)
    o_ref[...] = (acc + b_ref[...]).astype(o_ref.dtype)


def _linear_kernel_acc(x_ref, w_ref, b_ref, o_ref, acc_ref):
    # K-tiled variant: grid axis 2 is the contraction axis ("arbitrary").
    @pl.when(pl.program_id(2) == 0)
    def _():
        acc_ref[...] = jnp.zeros_like(acc_ref)

    acc_ref[...] += jnp.dot(x_ref[...], w_ref[...],
                            preferred_element_type=jnp.float32)

    @pl.when(pl.program_id(2) == pl.num_programs(2) - 1)
    def _():
        o_ref[...] = (acc_ref[...] + b_ref[...]).astype(o_ref.dtype)


# ------------------------------ tile choice ---------------------------------

def _round_up(x, m):
    return ((x + m - 1) // m) * m


def _vmem_budget_bytes():
    """~75% of per-core VMEM (generation-aware), conservative fallback 64 MiB."""
    cap = None
    try:
        cap = getattr(pltpu.get_tpu_info(), "vmem_capacity_bytes", None)
    except Exception:
        cap = None
    if not cap:
        cap = 64 * _MIB  # most restrictive generation (v7x per-TC VMEM)
    return int(cap) * 3 // 4


def _working_set_bytes(tm, tn, tk, in_item, out_item, with_acc):
    ws = (2 * tm * tk * in_item        # x blocks (double-buffered)
          + 2 * tk * tn * in_item      # W blocks
          + 2 * 1 * tn * 4             # bias blocks (f32)
          + 2 * tm * tn * out_item)    # output blocks
    if with_acc:
        ws += tm * tn * 4              # f32 accumulator scratch
    return ws


def _select_tiles(ent_num, hidden_dim, in_item, out_item, budget):
    # tm: fill the 256-wide MXU; 512 for big problems (mem-bound kernels like
    # big blocks); split small problems in two so v7x's two TCs both get work.
    if ent_num <= 16:
        tm = ent_num
    elif ent_num <= 256:
        tm = min(_round_up(pl.cdiv(ent_num, 2), 8), ent_num)
    elif ent_num < 512:
        tm = 256
    else:
        tm = 512

    # tk: tile the contraction axis only for very large H (otherwise full-K
    # working sets already fit).  K tail blocks would feed garbage into the
    # accumulator, so require divisibility; else keep full K.
    tk = hidden_dim
    if hidden_dim >= 4096:
        for cand in (1024, 512, 256, 128):
            if hidden_dim % cand == 0:
                tk = cand
                break

    # tn: largest lane-aligned width keeping one W block <= ~4 MiB (so the
    # double-buffered W slab is <= 8 MiB) -- safe under v5e's 16 MiB scoped
    # default and v7x's 64 MiB physical VMEM while still issuing big DMAs.
    w_block_budget = 4 * _MIB
    if hidden_dim <= 128 or tk * hidden_dim * in_item <= w_block_budget:
        tn = hidden_dim
    else:
        tn = max(128, (w_block_budget // (tk * in_item)) // 128 * 128)
        tn = min(tn, hidden_dim)

    # Final guard against the per-generation VMEM budget.
    def ws(tm_, tn_):
        return _working_set_bytes(tm_, tn_, tk, in_item, out_item,
                                  with_acc=(tk != hidden_dim))

    while tm > 64 and ws(tm, tn) > budget:
        tm = max(64, tm // 2)
    while tn > 128 and ws(tm, tn) > budget:
        tn = max(128, (tn // 2) // 128 * 128)
    return tm, tn, tk


# ------------------------------ op wrapper ----------------------------------

def _linear_op(x, w, b, *, compute_dtype=jnp.bfloat16, tm=None, tn=None,
               tk=None):
    ent_num, hidden_dim = x.shape
    assert w.shape == (hidden_dim, hidden_dim)
    out_dtype = x.dtype
    in_item = jnp.dtype(compute_dtype).itemsize
    out_item = jnp.dtype(out_dtype).itemsize

    # bf16 at the pallas_call boundary; f32 accumulation stays in-kernel.
    xc = x.astype(compute_dtype)
    wc = w.astype(compute_dtype)
    b2 = b.reshape(1, hidden_dim).astype(jnp.float32)

    budget = _vmem_budget_bytes()
    a_tm, a_tn, a_tk = _select_tiles(ent_num, hidden_dim, in_item, out_item,
                                     budget)
    tm = a_tm if tm is None else tm
    tn = a_tn if tn is None else tn
    tk = a_tk if tk is None else tk
    if hidden_dim % tk != 0:
        tk = hidden_dim  # never allow a masked K tail into the accumulator

    grid_m = pl.cdiv(ent_num, tm)
    grid_n = pl.cdiv(hidden_dim, tn)
    grid_k = hidden_dim // tk
    k_tiled = grid_k > 1

    vmem_needed = _working_set_bytes(tm, tn, tk, in_item, out_item, k_tiled)
    vmem_limit = None
    if vmem_needed > 14 * _MIB:
        # v5e's scoped-VMEM default is 16 MiB; ask explicitly.  Never below
        # the working set, never above the per-generation budget.
        vmem_limit = int(min(budget, max(vmem_needed + 2 * _MIB,
                                         vmem_needed * 5 // 4)))

    x_bytes = ent_num * hidden_dim * in_item
    w_bytes = hidden_dim * hidden_dim * in_item
    cost = pl.CostEstimate(
        flops=2 * ent_num * hidden_dim * hidden_dim,
        transcendentals=0,
        bytes_accessed=int(x_bytes * grid_n
                           + w_bytes * (grid_m if k_tiled else 1)
                           + hidden_dim * 4
                           + ent_num * hidden_dim * out_item),
    )
    out_shape = jax.ShapeDtypeStruct((ent_num, hidden_dim), out_dtype)

    if not k_tiled:
        # Grid ordered (n, m): the W/bias block index is constant across the
        # inner m loop, so the pipeliner skips redundant copies and the full
        # weight streams from HBM exactly once; only the (much smaller) x is
        # re-read grid_n times.
        grid_spec = pltpu.PrefetchScalarGridSpec(
            num_scalar_prefetch=0,
            grid=(grid_n, grid_m),
            in_specs=[
                pl.BlockSpec((tm, hidden_dim), lambda j, i: (i, 0)),
                pl.BlockSpec((hidden_dim, tn), lambda j, i: (0, j)),
                pl.BlockSpec((1, tn), lambda j, i: (0, j)),
            ],
            out_specs=pl.BlockSpec((tm, tn), lambda j, i: (i, j)),
        )
        semantics = ("parallel", "parallel")
        kernel = _linear_kernel
    else:
        # Very large hidden_dim: tile the contraction axis (innermost,
        # "arbitrary") with an f32 accumulator; working set no longer scales
        # with H, keeping v7x's 64 MiB VMEM safe.
        grid_spec = pltpu.PrefetchScalarGridSpec(
            num_scalar_prefetch=0,
            grid=(grid_n, grid_m, grid_k),
            in_specs=[
                pl.BlockSpec((tm, tk), lambda j, i, k: (i, k)),
                pl.BlockSpec((tk, tn), lambda j, i, k: (k, j)),
                pl.BlockSpec((1, tn), lambda j, i, k: (0, j)),
            ],
            out_specs=pl.BlockSpec((tm, tn), lambda j, i, k: (i, j)),
            scratch_shapes=[pltpu.VMEM((tm, tn), jnp.float32)],
        )
        semantics = ("parallel", "parallel", "arbitrary")
        kernel = _linear_kernel_acc

    return pl.pallas_call(
        kernel,
        out_shape=out_shape,
        grid_spec=grid_spec,
        compiler_params=pltpu.CompilerParams(
            dimension_semantics=semantics,
            vmem_limit_bytes=vmem_limit,
        ),
        cost_estimate=cost,
    )(xc, wc, b2)


class NiOp:
    """JAX/Pallas mirror of the PyTorch NiOp module."""

    def __init__(self, primitive, hidden_dim, ent_num, key,
                 compute_dtype=jnp.bfloat16):
        self.primitive = primitive
        self.hidden_dim = hidden_dim
        self.ent_num = ent_num
        self.compute_dtype = compute_dtype
        if primitive == "linear":
            kw, kb = jax.random.split(key)
            bound = 1.0 / (hidden_dim ** 0.5)  # matches nn.Linear init range
            self.w = jax.random.uniform(
                kw, (hidden_dim, hidden_dim), jnp.float32, -bound, bound)
            self.b = jax.random.uniform(
                kb, (hidden_dim,), jnp.float32, -bound, bound)
        else:
            self.w = None
            self.b = None

    def __call__(self, node_info_embed, *, tm=None, tn=None, tk=None):
        if self.primitive == "linear":
            ent_num, hidden_dim = node_info_embed.shape
            flops = 2 * ent_num * hidden_dim * hidden_dim
            if hidden_dim < 128 or flops < _PALLAS_MIN_FLOPS:
                # Tiny / lane-narrow problem: pallas_call dispatch + pipeline
                # prologue would dominate; let XLA fuse it (same bf16 compute
                # path with f32 accumulation).
                xc = node_info_embed.astype(self.compute_dtype)
                wc = self.w.astype(self.compute_dtype)
                y = jnp.dot(xc, wc, preferred_element_type=jnp.float32) + self.b
                return y.astype(node_info_embed.dtype)
            return _linear_op(node_info_embed, self.w, self.b,
                              compute_dtype=self.compute_dtype,
                              tm=tm, tn=tn, tk=tk)
        elif self.primitive == "identity":
            # Pure pass-through: no kernel, no HBM round-trip.
            return node_info_embed
        elif self.primitive == "zero":
            # No input DMA needed; XLA materializes/fuses the zeros for free.
            return jnp.zeros_like(node_info_embed)
        else:
            raise ValueError(f"unknown primitive: {self.primitive}")


# --------------------------------- main --------------------------------------

def _ref_linear(x, w, b, compute_dtype=jnp.bfloat16):
    xc = x.astype(compute_dtype).astype(jnp.float32)
    wc = w.astype(compute_dtype).astype(jnp.float32)
    return (xc @ wc + b).astype(x.dtype)


if __name__ == "__main__":
    root = jax.random.PRNGKey(0)
    k1, k2, k3, k4, k5 = jax.random.split(root, 5)

    # --- Pallas path with an m tail block: tm=256, grid (1, 2).
    ent_a, h_a = 384, 256
    xa = jax.random.normal(k1, (ent_a, h_a), jnp.float32)
    op_a = NiOp("linear", h_a, ent_a, k2)
    out_a = jax.block_until_ready(op_a(xa))
    ref_a = _ref_linear(xa, op_a.w, op_a.b)
    assert out_a.shape == (ent_a, h_a)
    assert jnp.allclose(out_a, ref_a, atol=5e-3, rtol=5e-3)

    # --- Pallas path with tm=512 blocks (ent_num >= 512).
    ent_b, h_b = 640, 384
    xb = jax.random.normal(k3, (ent_b, h_b), jnp.float32)
    op_b = NiOp("linear", h_b, ent_b, k4)
    out_b = jax.block_until_ready(op_b(xb))
    ref_b = _ref_linear(xb, op_b.w, op_b.b)
    assert jnp.allclose(out_b, ref_b, atol=5e-3, rtol=5e-3)

    # --- K-tiled accumulator path (tk forced small so it runs at demo shape).
    ent_c, h_c = 256, 256
    xc_ = jax.random.normal(k5, (ent_c, h_c), jnp.float32)
    op_c = NiOp("linear", h_c, ent_c, k2)
    out_c = jax.block_until_ready(_linear_op(xc_, op_c.w, op_c.b, tk=128))
    ref_c = _ref_linear(xc_, op_c.w, op_c.b)
    assert jnp.allclose(out_c, ref_c, atol=5e-3, rtol=5e-3)

    # --- small-shape XLA fallback (pallas_call overhead would dominate here).
    ent_d, h_d = 64, 128
    xd = jax.random.normal(k1, (ent_d, h_d), jnp.float32)
    op_d = NiOp("linear", h_d, ent_d, k4)
    out_d = jax.block_until_ready(op_d(xd))
    ref_d = _ref_linear(xd, op_d.w, op_d.b)
    assert jnp.allclose(out_d, ref_d, atol=5e-3, rtol=5e-3)

    # --- trivial primitives (no kernels by design).
    ident = jax.block_until_ready(NiOp("identity", h_a, ent_a, k2)(xa))
    zero = jax.block_until_ready(NiOp("zero", h_a, ent_a, k2)(xa))
    assert jnp.allclose(ident, xa)
    assert jnp.allclose(zero, 0.0)

    print("KERNEL_OK")
</pallas_src>

<mosaic_0001>
module attributes {stable_mosaic.version = 11 : i64} {
  func.func @_linear_kernel(%arg0: i32, %arg1: i32, %arg2: memref<256x256xbf16, #tpu.memory_space<vmem>>, %arg3: memref<256x256xbf16, #tpu.memory_space<vmem>>, %arg4: memref<1x256xf32, #tpu.memory_space<vmem>>, %arg5: memref<256x256xf32, #tpu.memory_space<vmem>>) attributes {dimension_semantics = [#tpu.dimension_semantics<parallel>, #tpu.dimension_semantics<parallel>], iteration_bounds = array<i64: 1, 2>, scalar_prefetch = 0 : i64, scratch_operands = 0 : i64, tpu.core_type = #tpu.core_type<tc>, window_params = [{transform_indices = @transform_0, window_bounds = array<i64: 256, 256>}, {transform_indices = @transform_1, window_bounds = array<i64: 256, 256>}, {transform_indices = @transform_2, window_bounds = array<i64: 1, 256>}, {transform_indices = @transform_3, window_bounds = array<i64: 256, 256>}]} {
    %c0 = arith.constant 0 : index
    %c0_0 = arith.constant 0 : index
    %0 = vector.load %arg2[%c0, %c0_0] : memref<256x256xbf16, #tpu.memory_space<vmem>>, vector<256x256xbf16>
    %c0_1 = arith.constant 0 : index
    %c0_2 = arith.constant 0 : index
    %1 = vector.load %arg3[%c0_1, %c0_2] : memref<256x256xbf16, #tpu.memory_space<vmem>>, vector<256x256xbf16>
    %cst = arith.constant dense<0.000000e+00> : vector<256x256xf32>
    %2 = tpu.matmul %0, %1, %cst {dimension_numbers = #tpu.dot_dimension_numbers<[1], [0], [0], [1], [0, 0, 1, 1], [], []>} : vector<256x256xbf16>, vector<256x256xbf16>, vector<256x256xf32> -> vector<256x256xf32>
    %c0_3 = arith.constant 0 : index
    %c0_4 = arith.constant 0 : index
    %3 = vector.load %arg4[%c0_3, %c0_4] : memref<1x256xf32, #tpu.memory_space<vmem>>, vector<1x256xf32>
    %4 = vector.broadcast %3 : vector<1x256xf32> to vector<256x256xf32>
    %5 = arith.addf %2, %4 : vector<256x256xf32>
    %c0_5 = arith.constant 0 : index
    %c0_6 = arith.constant 0 : index
    %6 = vector.load %arg5[%c0_5, %c0_6] : memref<256x256xf32, #tpu.memory_space<vmem>>, vector<256x256xf32>
    tpu.vector_store %arg5[%c0_5, %c0_6], %5 {strides = array<i32>} : memref<256x256xf32, #tpu.memory_space<vmem>>, vector<256x256xf32>,
    return
  }
  func.func @transform_0(%arg0: i32, %arg1: i32) -> (i32, i32) {
    %c0_i32 = arith.constant 0 : i32
    %c0_i32_0 = arith.constant 0 : i32
    return %arg1, %c0_i32 : i32, i32
  }
  func.func @transform_1(%arg0: i32, %arg1: i32) -> (i32, i32) {
    %c0_i32 = arith.constant 0 : i32
    %c0_i32_0 = arith.constant 0 : i32
    return %c0_i32, %arg0 : i32, i32
  }
  func.func @transform_2(%arg0: i32, %arg1: i32) -> (i32, i32) {
    %c0_i32 = arith.constant 0 : i32
    %c0_i32_0 = arith.constant 0 : i32
    return %c0_i32, %arg0 : i32, i32
  }
  func.func @transform_3(%arg0: i32, %arg1: i32) -> (i32, i32) {
    %c0_i32 = arith.constant 0 : i32
    return %arg1, %arg0 : i32, i32
  }
}

</mosaic_0001>

<bundles_post_ra>
// kernel: tpu_custom_call.1
= control target key start
LH: loop header
LB: loop body
LE: loop exit
PB: predicated region body
PF: predicated region fallthrough
CT: control target
= control target key end

     0   :  { %8 = vsyncpa [#allocation3], 0  ;;  %s1896_s0 = inlined_call_operand.hbm [shape: bf16[384,256], index: 0, kind: input, shape index: {}]   ;;  %s1897_s1 = inlined_call_operand.hbm [shape: bf16[256,256], index: 1, kind: input, shape index: {}]   ;;  %s1898_s2 = inlined_call_operand.vmem [shape: f32[1,256], index: 2, kind: input, shape index: {}]   ;;  %s1899_s3 = inlined_call_operand.hbm [shape: f32[384,256], index: 3, kind: output, shape index: {}]  }
   0x1   :  { %10 = vsyncpa [#allocation3 + $0x1], 0 }
   0x2   :  { %11 = vsyncpa [#allocation6], 0 }
   0x3   :  { %12 = vsyncpa [#allocation4], 0 }
   0x4   :  { %14 = vsyncpa [#allocation4 + $0x1], 0  ;;  %s1519_s12 = smov 0   ;;  %s1521_s13 = smov 0  }
   0x5   :  { %s1523_s14 = smov 0   ;;  %s1525_s15 = smov 0  }
   0x6   :  { %s1527_s16 = smov 0   ;;  %s1529_s17 = smov 0  }
   0x7 LB: > { %s1052_s18 = sadd.s32 4294967295, %s1488_s17   ;;  %s1053_s19 = sadd.s32 4294967294, %s1488_s17   ;;  %s1488_s17 = sphi %s1529_s17, %s20_s17   ;;  %s1484_s16 = sphi %s1527_s16, %s1914_s16   ;;  %s1480_s15 = sphi %s1525_s15, %s1913_s15   ;;  %s1476_s14 = sphi %s1523_s14, %s1912_s14   ;;  %s1472_s13 = sphi %s1521_s13, %s1911_s13   ;;  %s1468_s12 = sphi %s1519_s12, %s1910_s12  }
   0x8   : > { %s29_s20 = sadd.s32 1, %s1484_s16  ;;  %s39_s21 = sadd.s32 1, %s1476_s14 }
   0x9   : > { %p30_p0 = scmp.ge.s32.totalorder %s29_s20, 2  ;;  %p46_p1 = scmp.ne.s32.totalorder %s1476_s14, %s1472_s13 }
   0xa   : > { %p47_p2 = scmp.eq.s32.totalorder %s1488_s17, 0  ;;  %p52_p3 = scmp.ne.s32.totalorder %s1472_s13, %s1468_s12 }
   0xb   : > { %s1916_s20 = smov (%p30_p0, %s29_s20), 0  ;;  %p1564_p5 = scmp.eq.s32.totalorder %s1052_s18, 0 }
   0xc   : > { %p1560_p4 = por %p47_p2, %p46_p1  ;;  %s36_s24 = ssub.s32 %s1484_s16, %s1916_s20 }
   0xd   : > { %p130_p6 = scmp.eq.s32.totalorder %s1052_s18, 1  ;;  %p37_p7 = scmp.eq.s32.totalorder %s36_s24, 0 }
   0xe   : > { %p1572_p8 = por %p1564_p5, %p52_p3  ;;  %p136_p10 = scmp.eq.s32.totalorder %s1053_s19, 1 }
   0xf   : > { %p1576_p9 = por %p130_p6, %p46_p1  ;;  %p1054_p12 = scmp.ge.s32.totalorder %s1488_s17, 1 }
  0x10   : > { %s1903_s25 = scalar_select %p1572_p8, 1, 0 }
  0x11   : > { %s1904_s26 = scalar_select %p1576_p9, 1, 0 }
  0x12   : > { %s1581_s27 = scalar_select %p37_p7, %s1476_s14, %s39_s21  }
  0x13   : > { %p1583_p11 = por %p136_p10, %p52_p3  ;;  %p143_p13 = scmp.lt.s32.totalorder %s1488_s17, 3 }
  0x14   : > { %s1490_s30 = smov [#allocation5]  }
  0x15   : > { %s1905_s28 = scalar_select %p1583_p11, 1, 0 }
  0x16   : > { %p1589_p0 = pnand %p1054_p12, %p143_p13  ;;  %s158_s4 = sshll.u32 %s1490_s30, 4  ;;  %s159_s4 = int_to_ptr.vmem [resolvable:$true] %s158_s4 }
  0x17   : > { %s1363_s5 = scalar_lea.vmem %s159_s4, 4096  ;;  %p1371_p11 = scmp.lt.s32.totalorder %s159_s4, %s159_s4 }
  0x18   : > { %p1190_p1 = pneg %p1589_p0  ;;  %p1364_p3 = scmp.ne.s32.totalorder %s159_s4, %s1363_s5 }
  0x19   : > { %p1372_p9 = scmp.lt.s32.totalorder %s1363_s5, %s1363_s5 }
  0x1a   : > { %p1191_p2 = pnand %p1190_p1, %p1564_p5 }
  0x1b   : > { %p1373_p8 = por %p1372_p9, %p1371_p11 }
  0x1c   : > { %p1354_p6 = pneg %p1191_p2 }
  0x1e   : > { %p1366_p7 = pnand %p1364_p3, %p1354_p6 }
  0x20   : > { %p1367_p10 = pneg %p1366_p7 }
  0x22   : > { %p1374_p12 = pnand %p1373_p8, %p1367_p10 }
  0x24   : > { %1377 = shalt.err (!%p1374_p12)
}
  0x25   : > { %s1491_s6 = smov 128   ;;  %s1492_s7 = smov 8  }
  0x26   : > { %1193 = dma.hbm_to_vmem [thread:$0]  (!%p1191_p2), %s1897_s1, 4096, %s159_s4, [#allocation6], %s1491_s6, %s1491_s6, %s1492_s7  }
  0x27   : > { %p1057_p13 = scmp.ge.s32.totalorder %s1488_s17, 2 }
  0x29   : > { %176 = sbr.rel (%p1057_p13) target bundleno = 78 (0x4e), region = 24 }
  0x2e   : > { %179 = sbr.rel (!%p1560_p4) target bundleno = 78 (0x4e), region = 28  ;;  %s180_s10 = sand.u32 (%p1560_p4), 1, %s1476_s14  }
  0x2f   : > { %s1059_s11 = sshll.u32 (%p1560_p4), %s1484_s16, 5  ;;  %s1058_s18 = sshll.u32 (%p1560_p4), %s180_s10, 8 }
  0x30   : > { %s186_s19 = ssub.s32 (%p1560_p4), 48, %s1059_s11  ;;  %s1610_s30 = scalar_lea.sflag (%p1560_p4), [#allocation3], %s180_s10 }
  0x31   : > { %p187_p8 = scmp.lt.s32.totalorder (%p1560_p4), %s186_s19, 32  ;;  %s184_s4 = scalar_lea.vmem (%p1560_p4), [#allocation2], %s1058_s18 }
  0x33   : > { %s1918_s19 = smov (!%p187_p8, %s186_s19), 32 }
  0x34   : > { %s1607_s21 = sshll.u32 %s1918_s19, 7 }
  0x35   : > { %s192_s24 = ssub.s32 4096, %s1607_s21 }
  0x36   : > { %193 = vsyncadd %s1610_s30, %s192_s24  ;;  %p1062_p4 = scmp.ne.s32.totalorder %s1607_s21, 0  ;;  %s1148_s22 = sshll.u32 %s1484_s16, 12 }
  0x37   : > { %s1618_s7 = scalar_lea.hbm %s1896_s0, %s1148_s22  ;;  %s199_s8 = sshll.u32 %s184_s4, 4  ;;  %s1620_s8 = int_to_ptr.vmem [resolvable:$true] %s199_s8 }
  0x38   : > { %s1378_s9 = scalar_lea.hbm %s1618_s7, %s1607_s21  ;;  %s1382_s18 = scalar_lea.hbm %s1896_s0, 6144 }
  0x39   : > { %p1379_p9 = scmp.ne.s32.totalorder %s1618_s7, %s1378_s9  ;;  %p1384_p2 = scmp.lt.s32.totalorder %s1382_s18, %s1378_s9 }
  0x3b   : > { %p1380_p11 = pnand %p1379_p9, %p1062_p4 }
  0x3d   : > { %p1381_p1 = pneg %p1380_p11 }
  0x3f   : > { %p1386_p6 = pnand %p1384_p2, %p1381_p1 }
  0x41   : > { %1389 = shalt.err (!%p1386_p6)
}
  0x42   : > { %s1390_s19 = scalar_lea.vmem %s1620_s8, %s1607_s21  ;;  %s1493_s24 = smov [#allocation2]  }
  0x43   : > { %p1391_p3 = scmp.ne.s32.totalorder %s1620_s8, %s1390_s19  ;;  %s1394_s4 = sshll.u32 %s1493_s24, 4  ;;  %s1395_s4 = int_to_ptr.vmem [resolvable:$false] %s1394_s4 }
  0x44   : > { %s1396_s22 = scalar_lea.vmem %s1395_s4, 8192  ;;  %p1397_p12 = scmp.lt.s32.totalorder %s1620_s8, %s1395_s4 }
  0x45   : > { %p1392_p7 = pnand %p1391_p3, %p1062_p4  ;;  %p1398_p8 = scmp.lt.s32.totalorder %s1396_s22, %s1390_s19 }
  0x47   : > { %p1393_p10 = pneg %p1392_p7  ;;  %p1399_p9 = por %p1398_p8, %p1397_p12 }
  0x49   : > { %p1400_p11 = pnand %p1399_p9, %p1393_p10 }
  0x4b   : > { %1403 = shalt.err (!%p1400_p11)
}
  0x4c   : > { %s1494_s5 = smov 128   ;;  %s1495_s6 = smov 8  }
  0x4d   : > { %205 = dma.hbm_to_vmem [thread:$0]  (%p1062_p4), %s1618_s7, %s1607_s21, %s1620_s8, %s1610_s30, %s1494_s5, %s1494_s5, %s1495_s6  }
  0x4e PF: > { %211 = sbr.rel (%p1589_p0) target bundleno = 436 (0x1b4), region = 32  ;;  %s1645_s9 = sand.u32 (!%p1589_p0), 1, %s1472_s13  }
  0x4f   : > { %s1068_s10 = sshll.u32 (!%p1589_p0), %s1645_s9, 8  ;;  %s214_s11 = scalar_lea.sflag (!%p1589_p0), [#allocation3], %s1645_s9 }
  0x50   : > { %s1649_s18 = scalar_lea.vmem (!%p1589_p0), [#allocation2], %s1068_s10  ;;  %p1907_p1 = scmp.ne.s32.totalorder (!%p1589_p0), %s1903_s25, 0 }
  0x53   : > { %1455 = dma.done.wait (%p1907_p1), %s214_s11, 4096  }
  0x54   : > { %1457 = vsyncadd (%p1907_p1), %s214_s11, 4294963200 }
  0x55   : > { %1459 = dma.done.wait (%p1564_p5), [#allocation6], 4096  }
  0x56   : > { %1461 = vsyncadd (%p1564_p5), [#allocation6], 4294963200  ;;  %v1256_v0 = vld [vmem:[#allocation5 + $0x74] ss:$8 sps:$4 sm:$0xff]   ;;  %v1258_v1 = vld [vmem:[#allocation5 + $0x70] ss:$8 sps:$4 sm:$0xff]  }
  0x57   : > { %663 = vmatprep.subr.bf16.mxu0 %v1256_v0  ;;  %1152 = vmatprep.subr.bf16.mxu1 %v1256_v0  ;;  %v1259_v2 = vld [vmem:[#allocation5 + $0x64] ss:$8 sps:$4 sm:$0xff]   ;;  %v1261_v3 = vld [vmem:[#allocation5 + $0x60] ss:$8 sps:$4 sm:$0xff]   ;;  %v1262_v4 = vld [vmem:[#allocation5 + $0x54] ss:$8 sps:$4 sm:$0xff]   ;;  %v333_v0 = vlaneseq }
  0x58   : > { %664 = vmatpush1.bf16.msra.mxu0 %v1258_v1  ;;  %1168 = vmatpush1.bf16.msra.mxu1 %v1258_v1  ;;  %v1264_v5 = vld [vmem:[#allocation5 + $0x50] ss:$8 sps:$4 sm:$0xff]   ;;  %v1265_v6 = vld [vmem:[#allocation5 + $0x44] ss:$8 sps:$4 sm:$0xff]   ;;  %v1267_v7 = vld [vmem:[#allocation5 + $0x40] ss:$8 sps:$4 sm:$0xff]  }
  0x59   : > { %665 = vmatprep.subr.bf16.mxu0 %v1259_v2  ;;  %1153 = vmatprep.subr.bf16.mxu1 %v1259_v2  ;;  %v1268_v8 = vld [vmem:[#allocation5 + $0x34] ss:$8 sps:$4 sm:$0xff]   ;;  %v1270_v9 = vld [vmem:[#allocation5 + $0x30] ss:$8 sps:$4 sm:$0xff]   ;;  %v1271_v10 = vld [vmem:[#allocation5 + $0x24] ss:$8 sps:$4 sm:$0xff]  }
  0x5a   : > { %v1273_v11 = vld [vmem:[#allocation5 + $0x20] ss:$8 sps:$4 sm:$0xff]   ;;  %v1274_v12 = vld [vmem:[#allocation5 + $0x14] ss:$8 sps:$4 sm:$0xff]   ;;  %v1306_v13 = vld [vmem:[%s1649_s18 + $0x4] ss:$8 sps:$4 sm:$0xff]  }
  0x5b   : > { %v1276_v14 = vld [vmem:[#allocation5 + $0x10] ss:$8 sps:$4 sm:$0xff]   ;;  %v1309_v15 = vld [vmem:[%s1649_s18 + $0x84] ss:$8 sps:$4 sm:$0xff]   ;;  %695 = vmatprep.mubr.bf16.mxu0 %v1306_v13  ;;  %v1279_v17 = vld [vmem:[#allocation5] ss:$8 sps:$4 sm:$0xff]  }
  0x5c   : > { %666 = vmatpush1.bf16.msra.mxu0 %v1261_v3  ;;  %1169 = vmatpush1.bf16.msra.mxu1 %v1261_v3  ;;  %v1277_v16 = vld [vmem:[#allocation5 + $0x4] ss:$8 sps:$4 sm:$0xff]   ;;  %v1280_v18 = vld [vmem:[#allocation5 + $0xf4] ss:$8 sps:$4 sm:$0xff]   ;;  %v1282_v19 = vld [vmem:[#allocation5 + $0xf0] ss:$8 sps:$4 sm:$0xff]  }
  0x5d   : > { %667 = vmatprep.subr.bf16.mxu0 %v1262_v4  ;;  %1154 = vmatprep.subr.bf16.mxu1 %v1262_v4  ;;  %v1283_v20 = vld [vmem:[#allocation5 + $0xe4] ss:$8 sps:$4 sm:$0xff]   ;;  %v1285_v21 = vld [vmem:[#allocation5 + $0xe0] ss:$8 sps:$4 sm:$0xff]   ;;  %v1286_v22 = vld [vmem:[#allocation5 + $0xd4] ss:$8 sps:$4 sm:$0xff]  }
  0x5e   : > { %775 = vmatprep.mubr.bf16.mxu1 %v1309_v15  ;;  %v1288_v23 = vld [vmem:[#allocation5 + $0xd0] ss:$8 sps:$4 sm:$0xff]   ;;  %v1289_v24 = vld [vmem:[#allocation5 + $0xc4] ss:$8 sps:$4 sm:$0xff]   ;;  %v1291_v25 = vld [vmem:[#allocation5 + $0xc0] ss:$8 sps:$4 sm:$0xff]  }
  0x5f   : > { %v1292_v26 = vld [vmem:[#allocation5 + $0xb4] ss:$8 sps:$4 sm:$0xff]   ;;  %v1294_v27 = vld [vmem:[#allocation5 + $0xb0] ss:$8 sps:$4 sm:$0xff]   ;;  %v1295_v28 = vld [vmem:[#allocation5 + $0xa4] ss:$8 sps:$4 sm:$0xff]  }
  0x60   : > { %668 = vmatpush1.bf16.msra.mxu0 %v1264_v5  ;;  %1170 = vmatpush1.bf16.msra.mxu1 %v1264_v5  ;;  %v1297_v29 = vld [vmem:[#allocation5 + $0xa0] ss:$8 sps:$4 sm:$0xff]   ;;  %v1298_v30 = vld [vmem:[#allocation5 + $0x94] ss:$8 sps:$4 sm:$0xff]   ;;  %v1300_v31 = vld [vmem:[#allocation5 + $0x90] ss:$8 sps:$4 sm:$0xff]  }
  0x61   : > { %669 = vmatprep.subr.bf16.mxu0 %v1265_v6  ;;  %1155 = vmatprep.subr.bf16.mxu1 %v1265_v6  ;;  %v1301_v32 = vld [vmem:[#allocation5 + $0x84] ss:$8 sps:$4 sm:$0xff]   ;;  %v1303_v33 = vld [vmem:[#allocation5 + $0x80] ss:$8 sps:$4 sm:$0xff]   ;;  %v1310_v36 = vld [vmem:[%s1649_s18 + $0x14] ss:$8 sps:$4 sm:$0xff]  }
  0x62   : > { %v1304_v34 = vld [vmem:[%s1649_s18] ss:$8 sps:$4 sm:$0xff]   ;;  %v1312_v37 = vld [vmem:[%s1649_s18 + $0x94] ss:$8 sps:$4 sm:$0xff]   ;;  %v1314_v38 = vld [vmem:[%s1649_s18 + $0x10] ss:$8 sps:$4 sm:$0xff]  }
  0x63   : > { %v1307_v35 = vld [vmem:[%s1649_s18 + $0x80] ss:$8 sps:$4 sm:$0xff]   ;;  %v1315_v39 = vld [vmem:[%s1649_s18 + $0x90] ss:$8 sps:$4 sm:$0xff]   ;;  %v1316_v40 = vld [vmem:[%s1649_s18 + $0x24] ss:$8 sps:$4 sm:$0xff]  }
  0x64   : > { %670 = vmatpush1.bf16.msra.mxu0 %v1267_v7  ;;  %1171 = vmatpush1.bf16.msra.mxu1 %v1267_v7  ;;  %v1318_v41 = vld [vmem:[%s1649_s18 + $0xa4] ss:$8 sps:$4 sm:$0xff]   ;;  %v1320_v42 = vld [vmem:[%s1649_s18 + $0x20] ss:$8 sps:$4 sm:$0xff]   ;;  %v1322_v44 = vld [vmem:[%s1649_s18 + $0x34] ss:$8 sps:$4 sm:$0xff]  }
  0x65   : > { %671 = vmatprep.subr.bf16.mxu0 %v1268_v8  ;;  %1156 = vmatprep.subr.bf16.mxu1 %v1268_v8  ;;  %v1321_v43 = vld [vmem:[%s1649_s18 + $0xa0] ss:$8 sps:$4 sm:$0xff]   ;;  %v1324_v45 = vld [vmem:[%s1649_s18 + $0xb4] ss:$8 sps:$4 sm:$0xff]   ;;  %v1326_v46 = vld [vmem:[%s1649_s18 + $0x30] ss:$8 sps:$4 sm:$0xff]  }
  0x66   : > { %v1327_v47 = vld [vmem:[%s1649_s18 + $0xb0] ss:$8 sps:$4 sm:$0xff]   ;;  %v1328_v48 = vld [vmem:[%s1649_s18 + $0x44] ss:$8 sps:$4 sm:$0xff]   ;;  %v1332_v50 = vld [vmem:[%s1649_s18 + $0x40] ss:$8 sps:$4 sm:$0xff]  }
  0x67   : > { %v1330_v49 = vld [vmem:[%s1649_s18 + $0xc4] ss:$8 sps:$4 sm:$0xff]   ;;  %v1333_v51 = vld [vmem:[%s1649_s18 + $0xc0] ss:$8 sps:$4 sm:$0xff]   ;;  %v1334_v52 = vld [vmem:[%s1649_s18 + $0x54] ss:$8 sps:$4 sm:$0xff]  }
  0x68   : > { %672 = vmatpush1.bf16.msra.mxu0 %v1270_v9  ;;  %1172 = vmatpush1.bf16.msra.mxu1 %v1270_v9  ;;  %v1336_v53 = vld [vmem:[%s1649_s18 + $0xd4] ss:$8 sps:$4 sm:$0xff]   ;;  %v1338_v54 = vld [vmem:[%s1649_s18 + $0x50] ss:$8 sps:$4 sm:$0xff]   ;;  %v1340_v56 = vld [vmem:[%s1649_s18 + $0x64] ss:$8 sps:$4 sm:$0xff]  }
  0x69   : > { %673 = vmatprep.subr.bf16.mxu0 %v1271_v10  ;;  %1157 = vmatprep.subr.bf16.mxu1 %v1271_v10  ;;  %v1339_v55 = vld [vmem:[%s1649_s18 + $0xd0] ss:$8 sps:$4 sm:$0xff]   ;;  %v1342_v57 = vld [vmem:[%s1649_s18 + $0xe4] ss:$8 sps:$4 sm:$0xff]   ;;  %v1344_v58 = vld [vmem:[%s1649_s18 + $0x60] ss:$8 sps:$4 sm:$0xff]  }
  0x6a   : > { %v1345_v59 = vld [vmem:[%s1649_s18 + $0xe0] ss:$8 sps:$4 sm:$0xff]   ;;  %v1346_v60 = vld [vmem:[%s1649_s18 + $0x74] ss:$8 sps:$4 sm:$0xff]   ;;  %v1350_v62 = vld [vmem:[%s1649_s18 + $0x70] ss:$8 sps:$4 sm:$0xff]  }
  0x6b   : > { %v1348_v61 = vld [vmem:[%s1649_s18 + $0xf4] ss:$8 sps:$4 sm:$0xff]   ;;  %v1351_v63 = vld [vmem:[%s1649_s18 + $0xf0] ss:$8 sps:$4 sm:$0xff]   ;;  %v334_v1 = vshrl.u32 %v333_v0, 7  ;;  %s1070_s29 = sshll.u32 %s1645_s9, 9 }
  0x6c   : > { %674 = vmatpush1.bf16.msra.mxu0 %v1273_v11  ;;  %1173 = vmatpush1.bf16.msra.mxu1 %v1273_v11  ;;  %v331_v3 = vld [vmem:[%s1898_s2] sm:$0x3]  ;;  %s1701_s21 = scalar_lea.vmem [#allocation7], %s1070_s29  ;;  %s921_s30 = scalar_lea.sflag [#allocation4], %s1645_s9 }
  0x6d   : > { %675 = vmatprep.subr.bf16.mxu0 %v1274_v12  ;;  %1158 = vmatprep.subr.bf16.mxu1 %v1274_v12  ;;  %v335_v2 = vsub.s32 0, %v334_v1  ;;  %v339_v4 = vsub.s32 1, %v334_v1  ;;  %p1908_p5 = scmp.ne.s32.totalorder %s1904_s26, 0 }
  0x6e   : > { %s1136_s7 = sshll.u32 (%p1908_p5), %s1480_s15, 5 }
  0x6f   : > { %v1695_v5 = vrot.slane %v331_v3, %v335_v2  ;;  %v1697_v6 = vrot.slane %v331_v3, %v339_v4  ;;  %s930_s8 = ssub.s32 (%p1908_p5), 48, %s1136_s7 }
  0x70   : > { %676 = vmatpush1.bf16.msra.mxu0 %v1276_v14  ;;  %1174 = vmatpush1.bf16.msra.mxu1 %v1276_v14  ;;  %p931_p0 = scmp.lt.s32.totalorder (%p1908_p5), %s930_s8, 32 }
  0x71   : > { %677 = vmatprep.subr.bf16.mxu0 %v1277_v16  ;;  %1159 = vmatprep.subr.bf16.mxu1 %v1277_v16 }
  0x74   : > { %678 = vmatpush1.bf16.msra.mxu0 %v1279_v17  ;;  %1175 = vmatpush1.bf16.msra.mxu1 %v1279_v17 }
  0x75   : > { %679 = vmatprep.subr.bf16.mxu0 %v1280_v18  ;;  %1160 = vmatprep.subr.bf16.mxu1 %v1280_v18 }
  0x78   : > { %680 = vmatpush2.bf16.msra.mxu0 %v1282_v19  ;;  %1176 = vmatpush2.bf16.msra.mxu1 %v1282_v19 }
  0x79   : > { %681 = vmatprep.subr.bf16.mxu0 %v1283_v20  ;;  %1161 = vmatprep.subr.bf16.mxu1 %v1283_v20 }
  0x7c   : > { %682 = vmatpush2.bf16.msra.mxu0 %v1285_v21  ;;  %1177 = vmatpush2.bf16.msra.mxu1 %v1285_v21 }
  0x7d   : > { %683 = vmatprep.subr.bf16.mxu0 %v1286_v22  ;;  %1162 = vmatprep.subr.bf16.mxu1 %v1286_v22 }
  0x80   : > { %684 = vmatpush2.bf16.msra.mxu0 %v1288_v23  ;;  %1178 = vmatpush2.bf16.msra.mxu1 %v1288_v23 }
  0x81   : > { %685 = vmatprep.subr.bf16.mxu0 %v1289_v24  ;;  %1163 = vmatprep.subr.bf16.mxu1 %v1289_v24 }
  0x84   : > { %686 = vmatpush2.bf16.msra.mxu0 %v1291_v25  ;;  %1179 = vmatpush2.bf16.msra.mxu1 %v1291_v25 }
  0x85   : > { %687 = vmatprep.subr.bf16.mxu0 %v1292_v26  ;;  %1164 = vmatprep.subr.bf16.mxu1 %v1292_v26 }
  0x88   : > { %688 = vmatpush2.bf16.msra.mxu0 %v1294_v27  ;;  %1180 = vmatpush2.bf16.msra.mxu1 %v1294_v27 }
  0x89   : > { %689 = vmatprep.subr.bf16.mxu0 %v1295_v28  ;;  %1165 = vmatprep.subr.bf16.mxu1 %v1295_v28 }
  0x8c   : > { %690 = vmatpush2.bf16.msra.mxu0 %v1297_v29  ;;  %1181 = vmatpush2.bf16.msra.mxu1 %v1297_v29 }
  0x8d   : > { %691 = vmatprep.subr.bf16.mxu0 %v1298_v30  ;;  %1166 = vmatprep.subr.bf16.mxu1 %v1298_v30 }
  0x90   : > { %692 = vmatpush2.bf16.msra.mxu0 %v1300_v31  ;;  %1182 = vmatpush2.bf16.msra.mxu1 %v1300_v31 }
  0x91   : > { %693 = vmatprep.subr.bf16.mxu0 %v1301_v32  ;;  %1167 = vmatprep.subr.bf16.mxu1 %v1301_v32 }
  0x94   : > { %694 = vmatpush2.bf16.msra.mxu0 %v1303_v33  ;;  %1183 = vmatpush2.bf16.msra.mxu1 %v1303_v33 }
  0x97   : > { %696 = vmatmul.mubr.bf16.vlgmr.msra.gmra.mxu0 %v1304_v34  ;;  %776 = vmatmul.mubr.bf16.vlgmr.msra.gmra.mxu1 %v1307_v35 }
  0x98   : > { %705 = vmatprep.mubr.bf16.mxu0 %v1310_v36  ;;  %785 = vmatprep.mubr.bf16.mxu1 %v1312_v37 }
  0x9f   : > { %706 = vmatmul.mubr.bf16.gmra.mxu0 %v1314_v38  ;;  %786 = vmatmul.mubr.bf16.gmra.mxu1 %v1315_v39 }
  0xa0   : > { %715 = vmatprep.mubr.bf16.mxu0 %v1316_v40  ;;  %795 = vmatprep.mubr.bf16.mxu1 %v1318_v41 }
  0xa7   : > { %716 = vmatmul.mubr.bf16.gmra.mxu0 %v1320_v42  ;;  %796 = vmatmul.mubr.bf16.gmra.mxu1 %v1321_v43 }
  0xa8   : > { %725 = vmatprep.mubr.bf16.mxu0 %v1322_v44  ;;  %805 = vmatprep.mubr.bf16.mxu1 %v1324_v45 }
  0xaf   : > { %726 = vmatmul.mubr.bf16.gmra.mxu0 %v1326_v46  ;;  %806 = vmatmul.mubr.bf16.gmra.mxu1 %v1327_v47 }
  0xb0   : > { %735 = vmatprep.mubr.bf16.mxu0 %v1328_v48  ;;  %815 = vmatprep.mubr.bf16.mxu1 %v1330_v49 }
  0xb7   : > { %736 = vmatmul.mubr.bf16.gmra.mxu0 %v1332_v50  ;;  %816 = vmatmul.mubr.bf16.gmra.mxu1 %v1333_v51 }
  0xb8   : > { %745 = vmatprep.mubr.bf16.mxu0 %v1334_v52  ;;  %825 = vmatprep.mubr.bf16.mxu1 %v1336_v53 }
  0xbf   : > { %746 = vmatmul.mubr.bf16.gmra.mxu0 %v1338_v54  ;;  %826 = vmatmul.mubr.bf16.gmra.mxu1 %v1339_v55 }
  0xc0   : > { %755 = vmatprep.mubr.bf16.mxu0 %v1340_v56  ;;  %835 = vmatprep.mubr.bf16.mxu1 %v1342_v57 }
  0xc7   : > { %756 = vmatmul.mubr.bf16.gmra.mxu0 %v1344_v58  ;;  %836 = vmatmul.mubr.bf16.gmra.mxu1 %v1345_v59 }
  0xc8   : > { %765 = vmatprep.mubr.bf16.mxu0 %v1346_v60  ;;  %845 = vmatprep.mubr.bf16.mxu1 %v1348_v61 }
  0xcf   : > { %766 = vmatmul.mubr.bf16.gmra.mxu0 %v1350_v62  ;;  %846 = vmatmul.mubr.bf16.gmra.mxu1 %v1351_v63 }
 0x157   : > { %v697_v7 = vpop.f32.mrf.mxu0  ;;  %v777_v8 = vpop.f32.mrf.mxu1 }
 0x158   : > { %v698_v9 = vadd.f32 %v697_v7, %v1695_v5  ;;  %v778_v10 = vadd.f32 %v777_v8, %v1695_v5 }
 0x159   : > { %v699_v11 = vpop.f32.mrf.mxu0  ;;  %v779_v12 = vpop.f32.mrf.mxu1 }
 0x15a   : > { %856 = vst [vmem:[%s1701_s21] sm:$0xff] %v698_v9  ;;  %888 = vst [vmem:[%s1701_s21 + $0x100] sm:$0xff] %v778_v10  ;;  %v700_v13 = vadd.f32 %v699_v11, %v1697_v6  ;;  %v780_v14 = vadd.f32 %v779_v12, %v1697_v6 }
 0x15b   : > { %v701_v15 = vpop.f32.mrf.mxu0  ;;  %v781_v16 = vpop.f32.mrf.mxu1 }
 0x15c   : > { %857 = vst [vmem:[%s1701_s21 + $0x8] sm:$0xff] %v700_v13  ;;  %889 = vst [vmem:[%s1701_s21 + $0x108] sm:$0xff] %v780_v14  ;;  %v702_v17 = vadd.f32 %v701_v15, %v1695_v5  ;;  %v782_v18 = vadd.f32 %v781_v16, %v1695_v5 }
 0x15d   : > { %v703_v19 = vpop.f32.mrf.mxu0  ;;  %v783_v20 = vpop.f32.mrf.mxu1 }
 0x15e   : > { %858 = vst [vmem:[%s1701_s21 + $0x10] sm:$0xff] %v702_v17  ;;  %890 = vst [vmem:[%s1701_s21 + $0x110] sm:$0xff] %v782_v18  ;;  %v704_v21 = vadd.f32 %v703_v19, %v1697_v6  ;;  %v784_v22 = vadd.f32 %v783_v20, %v1697_v6 }
 0x15f   : > { %v707_v23 = vpop.f32.mrf.mxu0  ;;  %v787_v24 = vpop.f32.mrf.mxu1 }
 0x160   : > { %859 = vst [vmem:[%s1701_s21 + $0x18] sm:$0xff] %v704_v21  ;;  %891 = vst [vmem:[%s1701_s21 + $0x118] sm:$0xff] %v784_v22  ;;  %v708_v25 = vadd.f32 %v707_v23, %v1695_v5  ;;  %v788_v26 = vadd.f32 %v787_v24, %v1695_v5 }
 0x161   : > { %v709_v27 = vpop.f32.mrf.mxu0  ;;  %v789_v28 = vpop.f32.mrf.mxu1 }
 0x162   : > { %860 = vst [vmem:[%s1701_s21 + $0x20] sm:$0xff] %v708_v25  ;;  %892 = vst [vmem:[%s1701_s21 + $0x120] sm:$0xff] %v788_v26  ;;  %v710_v29 = vadd.f32 %v709_v27, %v1697_v6  ;;  %v790_v30 = vadd.f32 %v789_v28, %v1697_v6 }
 0x163   : > { %v711_v31 = vpop.f32.mrf.mxu0  ;;  %v791_v32 = vpop.f32.mrf.mxu1 }
 0x164   : > { %861 = vst [vmem:[%s1701_s21 + $0x28] sm:$0xff] %v710_v29  ;;  %893 = vst [vmem:[%s1701_s21 + $0x128] sm:$0xff] %v790_v30  ;;  %v712_v33 = vadd.f32 %v711_v31, %v1695_v5  ;;  %v792_v34 = vadd.f32 %v791_v32, %v1695_v5 }
 0x165   : > { %v713_v35 = vpop.f32.mrf.mxu0  ;;  %v793_v36 = vpop.f32.mrf.mxu1 }
 0x166   : > { %862 = vst [vmem:[%s1701_s21 + $0x30] sm:$0xff] %v712_v33  ;;  %894 = vst [vmem:[%s1701_s21 + $0x130] sm:$0xff] %v792_v34  ;;  %v714_v37 = vadd.f32 %v713_v35, %v1697_v6  ;;  %v794_v38 = vadd.f32 %v793_v36, %v1697_v6 }
 0x167   : > { %v717_v39 = vpop.f32.mrf.mxu0  ;;  %v797_v40 = vpop.f32.mrf.mxu1 }
 0x168   : > { %863 = vst [vmem:[%s1701_s21 + $0x38] sm:$0xff] %v714_v37  ;;  %895 = vst [vmem:[%s1701_s21 + $0x138] sm:$0xff] %v794_v38  ;;  %v718_v41 = vadd.f32 %v717_v39, %v1695_v5  ;;  %v798_v42 = vadd.f32 %v797_v40, %v1695_v5 }
 0x169   : > { %v719_v43 = vpop.f32.mrf.mxu0  ;;  %v799_v44 = vpop.f32.mrf.mxu1 }
 0x16a   : > { %864 = vst [vmem:[%s1701_s21 + $0x40] sm:$0xff] %v718_v41  ;;  %896 = vst [vmem:[%s1701_s21 + $0x140] sm:$0xff] %v798_v42  ;;  %v720_v45 = vadd.f32 %v719_v43, %v1697_v6  ;;  %v800_v46 = vadd.f32 %v799_v44, %v1697_v6 }
 0x16b   : > { %v721_v47 = vpop.f32.mrf.mxu0  ;;  %v801_v48 = vpop.f32.mrf.mxu1 }
 0x16c   : > { %865 = vst [vmem:[%s1701_s21 + $0x48] sm:$0xff] %v720_v45  ;;  %897 = vst [vmem:[%s1701_s21 + $0x148] sm:$0xff] %v800_v46  ;;  %v722_v49 = vadd.f32 %v721_v47, %v1695_v5  ;;  %v802_v50 = vadd.f32 %v801_v48, %v1695_v5 }
 0x16d   : > { %v723_v51 = vpop.f32.mrf.mxu0  ;;  %v803_v52 = vpop.f32.mrf.mxu1 }
 0x16e   : > { %866 = vst [vmem:[%s1701_s21 + $0x50] sm:$0xff] %v722_v49  ;;  %898 = vst [vmem:[%s1701_s21 + $0x150] sm:$0xff] %v802_v50  ;;  %v724_v53 = vadd.f32 %v723_v51, %v1697_v6  ;;  %v804_v54 = vadd.f32 %v803_v52, %v1697_v6 }
 0x16f   : > { %v727_v55 = vpop.f32.mrf.mxu0  ;;  %v807_v56 = vpop.f32.mrf.mxu1 }
 0x170   : > { %867 = vst [vmem:[%s1701_s21 + $0x58] sm:$0xff] %v724_v53  ;;  %899 = vst [vmem:[%s1701_s21 + $0x158] sm:$0xff] %v804_v54  ;;  %v728_v57 = vadd.f32 %v727_v55, %v1695_v5  ;;  %v808_v58 = vadd.f32 %v807_v56, %v1695_v5 }
 0x171   : > { %v729_v59 = vpop.f32.mrf.mxu0  ;;  %v809_v60 = vpop.f32.mrf.mxu1 }
 0x172   : > { %868 = vst [vmem:[%s1701_s21 + $0x60] sm:$0xff] %v728_v57  ;;  %900 = vst [vmem:[%s1701_s21 + $0x160] sm:$0xff] %v808_v58  ;;  %v730_v61 = vadd.f32 %v729_v59, %v1697_v6  ;;  %v810_v62 = vadd.f32 %v809_v60, %v1697_v6 }
 0x173   : > { %v731_v63 = vpop.f32.mrf.mxu0  ;;  %v811_v0 = vpop.f32.mrf.mxu1 }
 0x174   : > { %869 = vst [vmem:[%s1701_s21 + $0x68] sm:$0xff] %v730_v61  ;;  %901 = vst [vmem:[%s1701_s21 + $0x168] sm:$0xff] %v810_v62  ;;  %v732_v1 = vadd.f32 %v731_v63, %v1695_v5  ;;  %v812_v2 = vadd.f32 %v811_v0, %v1695_v5 }
 0x175   : > { %v733_v3 = vpop.f32.mrf.mxu0  ;;  %v813_v4 = vpop.f32.mrf.mxu1 }
 0x176   : > { %870 = vst [vmem:[%s1701_s21 + $0x70] sm:$0xff] %v732_v1  ;;  %902 = vst [vmem:[%s1701_s21 + $0x170] sm:$0xff] %v812_v2  ;;  %v734_v7 = vadd.f32 %v733_v3, %v1697_v6  ;;  %v814_v8 = vadd.f32 %v813_v4, %v1697_v6 }
 0x177   : > { %v737_v9 = vpop.f32.mrf.mxu0  ;;  %v817_v10 = vpop.f32.mrf.mxu1 }
 0x178   : > { %871 = vst [vmem:[%s1701_s21 + $0x78] sm:$0xff] %v734_v7  ;;  %903 = vst [vmem:[%s1701_s21 + $0x178] sm:$0xff] %v814_v8  ;;  %v738_v11 = vadd.f32 %v737_v9, %v1695_v5  ;;  %v818_v12 = vadd.f32 %v817_v10, %v1695_v5 }
 0x179   : > { %v739_v13 = vpop.f32.mrf.mxu0  ;;  %v819_v14 = vpop.f32.mrf.mxu1 }
 0x17a   : > { %872 = vst [vmem:[%s1701_s21 + $0x80] sm:$0xff] %v738_v11  ;;  %904 = vst [vmem:[%s1701_s21 + $0x180] sm:$0xff] %v818_v12  ;;  %v740_v15 = vadd.f32 %v739_v13, %v1697_v6  ;;  %v820_v16 = vadd.f32 %v819_v14, %v1697_v6 }
 0x17b   : > { %v741_v17 = vpop.f32.mrf.mxu0  ;;  %v821_v18 = vpop.f32.mrf.mxu1 }
 0x17c   : > { %873 = vst [vmem:[%s1701_s21 + $0x88] sm:$0xff] %v740_v15  ;;  %905 = vst [vmem:[%s1701_s21 + $0x188] sm:$0xff] %v820_v16  ;;  %v742_v19 = vadd.f32 %v741_v17, %v1695_v5  ;;  %v822_v20 = vadd.f32 %v821_v18, %v1695_v5 }
 0x17d   : > { %v743_v21 = vpop.f32.mrf.mxu0  ;;  %v823_v22 = vpop.f32.mrf.mxu1 }
 0x17e   : > { %874 = vst [vmem:[%s1701_s21 + $0x90] sm:$0xff] %v742_v19  ;;  %906 = vst [vmem:[%s1701_s21 + $0x190] sm:$0xff] %v822_v20  ;;  %v744_v23 = vadd.f32 %v743_v21, %v1697_v6  ;;  %v824_v24 = vadd.f32 %v823_v22, %v1697_v6 }
 0x17f   : > { %v747_v25 = vpop.f32.mrf.mxu0  ;;  %v827_v26 = vpop.f32.mrf.mxu1 }
 0x180   : > { %875 = vst [vmem:[%s1701_s21 + $0x98] sm:$0xff] %v744_v23  ;;  %907 = vst [vmem:[%s1701_s21 + $0x198] sm:$0xff] %v824_v24  ;;  %v748_v27 = vadd.f32 %v747_v25, %v1695_v5  ;;  %v828_v28 = vadd.f32 %v827_v26, %v1695_v5 }
 0x181   : > { %v749_v29 = vpop.f32.mrf.mxu0  ;;  %v829_v30 = vpop.f32.mrf.mxu1 }
 0x182   : > { %876 = vst [vmem:[%s1701_s21 + $0xa0] sm:$0xff] %v748_v27  ;;  %908 = vst [vmem:[%s1701_s21 + $0x1a0] sm:$0xff] %v828_v28  ;;  %v750_v31 = vadd.f32 %v749_v29, %v1697_v6  ;;  %v830_v32 = vadd.f32 %v829_v30, %v1697_v6 }
 0x183   : > { %v751_v33 = vpop.f32.mrf.mxu0  ;;  %v831_v34 = vpop.f32.mrf.mxu1 }
 0x184   : > { %877 = vst [vmem:[%s1701_s21 + $0xa8] sm:$0xff] %v750_v31  ;;  %909 = vst [vmem:[%s1701_s21 + $0x1a8] sm:$0xff] %v830_v32  ;;  %v752_v35 = vadd.f32 %v751_v33, %v1695_v5  ;;  %v832_v36 = vadd.f32 %v831_v34, %v1695_v5 }
 0x185   : > { %v753_v37 = vpop.f32.mrf.mxu0  ;;  %v833_v38 = vpop.f32.mrf.mxu1 }
 0x186   : > { %878 = vst [vmem:[%s1701_s21 + $0xb0] sm:$0xff] %v752_v35  ;;  %910 = vst [vmem:[%s1701_s21 + $0x1b0] sm:$0xff] %v832_v36  ;;  %v754_v39 = vadd.f32 %v753_v37, %v1697_v6  ;;  %v834_v40 = vadd.f32 %v833_v38, %v1697_v6 }
 0x187   : > { %v757_v41 = vpop.f32.mrf.mxu0  ;;  %v837_v42 = vpop.f32.mrf.mxu1 }
 0x188   : > { %879 = vst [vmem:[%s1701_s21 + $0xb8] sm:$0xff] %v754_v39  ;;  %911 = vst [vmem:[%s1701_s21 + $0x1b8] sm:$0xff] %v834_v40  ;;  %v758_v43 = vadd.f32 %v757_v41, %v1695_v5  ;;  %v838_v44 = vadd.f32 %v837_v42, %v1695_v5 }
 0x189   : > { %v759_v45 = vpop.f32.mrf.mxu0  ;;  %v839_v46 = vpop.f32.mrf.mxu1 }
 0x18a   : > { %880 = vst [vmem:[%s1701_s21 + $0xc0] sm:$0xff] %v758_v43  ;;  %912 = vst [vmem:[%s1701_s21 + $0x1c0] sm:$0xff] %v838_v44  ;;  %v760_v47 = vadd.f32 %v759_v45, %v1697_v6  ;;  %v840_v48 = vadd.f32 %v839_v46, %v1697_v6 }
 0x18b   : > { %v761_v49 = vpop.f32.mrf.mxu0  ;;  %v841_v50 = vpop.f32.mrf.mxu1 }
 0x18c   : > { %881 = vst [vmem:[%s1701_s21 + $0xc8] sm:$0xff] %v760_v47  ;;  %913 = vst [vmem:[%s1701_s21 + $0x1c8] sm:$0xff] %v840_v48  ;;  %v762_v51 = vadd.f32 %v761_v49, %v1695_v5  ;;  %v842_v52 = vadd.f32 %v841_v50, %v1695_v5 }
 0x18d   : > { %v763_v53 = vpop.f32.mrf.mxu0  ;;  %v843_v54 = vpop.f32.mrf.mxu1 }
 0x18e   : > { %882 = vst [vmem:[%s1701_s21 + $0xd0] sm:$0xff] %v762_v51  ;;  %914 = vst [vmem:[%s1701_s21 + $0x1d0] sm:$0xff] %v842_v52  ;;  %v764_v55 = vadd.f32 %v763_v53, %v1697_v6  ;;  %v844_v56 = vadd.f32 %v843_v54, %v1697_v6 }
 0x18f   : > { %v767_v57 = vpop.f32.mrf.mxu0  ;;  %v847_v58 = vpop.f32.mrf.mxu1 }
 0x190   : > { %883 = vst [vmem:[%s1701_s21 + $0xd8] sm:$0xff] %v764_v55  ;;  %915 = vst [vmem:[%s1701_s21 + $0x1d8] sm:$0xff] %v844_v56  ;;  %v768_v59 = vadd.f32 %v767_v57, %v1695_v5  ;;  %v848_v60 = vadd.f32 %v847_v58, %v1695_v5 }
 0x191   : > { %v769_v61 = vpop.f32.mrf.mxu0  ;;  %v849_v62 = vpop.f32.mrf.mxu1 }
 0x192   : > { %884 = vst [vmem:[%s1701_s21 + $0xe0] sm:$0xff] %v768_v59  ;;  %916 = vst [vmem:[%s1701_s21 + $0x1e0] sm:$0xff] %v848_v60  ;;  %v770_v63 = vadd.f32 %v769_v61, %v1697_v6  ;;  %v850_v0 = vadd.f32 %v849_v62, %v1697_v6 }
 0x193   : > { %v771_v1 = vpop.f32.mrf.mxu0  ;;  %v851_v2 = vpop.f32.mrf.mxu1 }
 0x194   : > { %885 = vst [vmem:[%s1701_s21 + $0xe8] sm:$0xff] %v770_v63  ;;  %917 = vst [vmem:[%s1701_s21 + $0x1e8] sm:$0xff] %v850_v0  ;;  %v772_v3 = vadd.f32 %v771_v1, %v1695_v5  ;;  %v852_v4 = vadd.f32 %v851_v2, %v1695_v5  ;;  %927 = sbr.rel (!%p1908_p5) target bundleno = 436 (0x1b4), region = 44 }
 0x195   : > { %v773_v7 = vpop.f32.mrf.mxu0  ;;  %v853_v8 = vpop.f32.mrf.mxu1 }
 0x196   : > { %886 = vst [vmem:[%s1701_s21 + $0xf0] sm:$0xff] %v772_v3  ;;  %918 = vst [vmem:[%s1701_s21 + $0x1f0] sm:$0xff] %v852_v4  ;;  %v774_v9 = vadd.f32 %v773_v7, %v1697_v6  ;;  %v854_v10 = vadd.f32 %v853_v8, %v1697_v6 }
 0x198   : > { %887 = vst [vmem:[%s1701_s21 + $0xf8] sm:$0xff] %v774_v9  ;;  %919 = vst [vmem:[%s1701_s21 + $0x1f8] sm:$0xff] %v854_v10 }
 0x199   : > { %s1920_s8 = smov (!%p931_p0, %s930_s8), 32 }
 0x19a   : > { %s1833_s19 = sshll.u32 %s1920_s8, 8 }
 0x19b   : > { %s936_s24 = ssub.s32 8192, %s1833_s19 }
 0x19c   : > { %937 = vsyncadd %s921_s30, %s936_s24  ;;  %p1139_p4 = scmp.ne.s32.totalorder %s1833_s19, 0  ;;  %s1151_s26 = sshll.u32 %s1480_s15, 13 }
 0x19d   : > { %s1843_s5 = scalar_lea.hbm %s1899_s3, %s1151_s26  ;;  %s944_s6 = sshll.u32 %s1701_s21, 4  ;;  %s1846_s6 = int_to_ptr.vmem [resolvable:$true] %s944_s6 }
 0x19e   : > { %s1404_s10 = scalar_lea.vmem %s1846_s6, %s1833_s19  ;;  %s1496_s11 = smov [#allocation7]  }
 0x19f   : > { %p1405_p2 = scmp.ne.s32.totalorder %s1846_s6, %s1404_s10  ;;  %s1408_s18 = sshll.u32 %s1496_s11, 4  ;;  %s1409_s18 = int_to_ptr.vmem [resolvable:$false] %s1408_s18 }
 0x1a0   : > { %s1410_s15 = scalar_lea.vmem %s1409_s18, 16384  ;;  %p1411_p7 = scmp.lt.s32.totalorder %s1846_s6, %s1409_s18 }
 0x1a1   : > { %p1406_p6 = pnand %p1405_p2, %p1139_p4  ;;  %p1412_p10 = scmp.lt.s32.totalorder %s1410_s15, %s1404_s10 }
 0x1a3   : > { %p1407_p3 = pneg %p1406_p6  ;;  %p1413_p12 = por %p1412_p10, %p1411_p7 }
 0x1a5   : > { %p1414_p8 = pnand %p1413_p12, %p1407_p3 }
 0x1a7   : > { %1417 = shalt.err (!%p1414_p8)
}
 0x1a8   : > { %s1418_s23 = scalar_lea.hbm %s1843_s5, %s1833_s19  ;;  %s1422_s21 = scalar_lea.hbm %s1899_s3, 12288 }
 0x1a9   : > { %p1419_p9 = scmp.ne.s32.totalorder %s1843_s5, %s1418_s23  ;;  %p1423_p5 = scmp.lt.s32.totalorder %s1843_s5, %s1899_s3 }
 0x1aa   : > { %p1424_p0 = scmp.lt.s32.totalorder %s1422_s21, %s1418_s23 }
 0x1ab   : > { %p1420_p11 = pnand %p1419_p9, %p1139_p4 }
 0x1ac   : > { %p1425_p2 = por %p1424_p0, %p1423_p5 }
 0x1ad   : > { %p1421_p1 = pneg %p1420_p11 }
 0x1af   : > { %p1426_p6 = pnand %p1425_p2, %p1421_p1 }
 0x1b1   : > { %1429 = shalt.err (!%p1426_p6)
}
 0x1b2   : > { %s1497_s24 = smov 256   ;;  %s1498_s26 = smov 16  }
 0x1b3   : > { %950 = dma.vmem_to_hbm [thread:$0]  (%p1139_p4), %s1846_s6, %s1833_s19, %s1843_s5, %s921_s30, %s1497_s24, %s1497_s24, %s1498_s26  }
 0x1b4 PF: > { %s959_s4 = sand.u32 1, %s1468_s12   ;;  %p1909_p3 = scmp.ne.s32.totalorder %s1905_s28, 0 }
 0x1b5   : > { %s960_s22 = scalar_lea.sflag [#allocation4], %s959_s4 }
 0x1b6   : > { %p1195_p7 = pnand %p1057_p13, %p1909_p3 }
 0x1b8   : > { %p1196_p10 = pneg %p1195_p7 }
 0x1ba   : > { %1463 = dma.done.wait (%p1196_p10), %s960_s22, 8192  }
 0x1bb   : > { %1465 = vsyncadd (%p1196_p10), %s960_s22, 4294959104  ;;  %s20_s17 = sadd.s32 1, %s1488_s17   ;;  %s1910_s12 = smov %s1472_s13 }
 0x1bc   : > { %p17_p12 = scmp.ge.s32.totalorder %s20_s17, 4   ;;  %s1911_s13 = smov %s1476_s14 }
 0x1bd   : > { %s1912_s14 = smov %s1581_s27  ;;  %s1913_s15 = smov %s1484_s16 }
 0x1be   : > { %s1914_s16 = smov %s1916_s20  ;;  %19 = sbr.rel (!%p17_p12) target bundleno = 7 (0x7), region = 85 }
 0x1c3   :  { %965 = vsyncpa [#allocation3], 1 }
 0x1c4   :  { %967 = vsyncpa [#allocation3 + $0x1], 1 }
 0x1c5   :  { %968 = vsyncpa [#allocation6], 1 }
 0x1c6   :  { %969 = vsyncpa [#allocation4], 1 }
 0x1c7   :  { %971 = vsyncpa [#allocation4 + $0x1], 1 }

</bundles_post_ra>
